<compile_context>
chip_gen: v6e
topology: v6e:2x2x1
jax: 0.10.0
libtpu: 0.0.40
codegen_flags: <defaults>
</compile_context>

<pallas_src>
import functools

import jax
import jax.numpy as jnp
from jax.experimental import pallas as pl
from jax.experimental.pallas import tpu as pltpu


def _round_up(v, m):
    return ((v + m - 1) // m) * m


def _tpu_vmem_capacity_bytes(default=64 * 2**20):
    """Physical VMEM per TensorCore (64 MiB on v7x, 128 MiB on v5e/v6e)."""
    try:
        info = pltpu.get_tpu_info()
        for attr in ("vmem_capacity_bytes", "vmem_bytes", "vmem_size_bytes"):
            v = getattr(info, attr, None)
            if v:
                return int(v)
    except Exception:
        pass
    return default  # conservative (v7x) fallback


def _feature_alignment(real_dims):
    """Lane/MXU alignment for feature dims.

    v6e/v7x MXU passes are 2x256^2, so large real widths benefit from
    256-aligned operands; v5e (4x128^2) and tiny widths stay at 128 (for tiny
    dims the extra padding flops exceed the utilization gain).
    """
    if max(real_dims) < 192:
        return 128
    try:
        name = str(getattr(pltpu.get_tpu_info(), "chip_version", "")).lower()
        if "v5" in name:
            return 128
    except Exception:
        pass
    return 256


def _gcn_fused_kernel(*refs, num_layers, compute_dtype):
    """All GCN layers chained inside one kernel body (static Python loop).

    Ref order: x, adj, w_0..w_{L-1}, b_0..b_{L-1}, out.
    """
    x_ref, adj_ref = refs[0], refs[1]
    w_refs = refs[2:2 + num_layers]
    b_refs = refs[2 + num_layers:2 + 2 * num_layers]
    o_ref = refs[2 + 2 * num_layers]

    adj = adj_ref[...]                                   # [Np, Np]  compute_dtype
    h = x_ref[...]                                       # [Np, D_0] compute_dtype
    for layer in range(num_layers):
        # Linear: h W + b  (bias applied before propagation, as GCNConv_dense).
        hw = jnp.dot(h, w_refs[layer][...],
                     preferred_element_type=jnp.float32)           # [Np, D_l] f32
        hw = hw + b_refs[layer][...]                                # [1, D_l] f32 bcast
        # Propagation: Adj @ (hW + b), f32 accumulation on the MXU.  Padded
        # rows of hw carry the bias, but Adj's zero padded columns remove that
        # contamination, so rows [:n] stay exact.
        agg = jnp.dot(adj, hw.astype(compute_dtype),
                      preferred_element_type=jnp.float32)           # [Np, D_l] f32
        if layer < num_layers - 1:
            h = jnp.maximum(agg, 0.0).astype(compute_dtype)         # ReLU -> bf16
        else:
            o_ref[...] = agg.astype(o_ref.dtype)
    # TODO(synk): software-pipeline the epilogue (split rows into two halves
    # so bias+ReLU+cast of one half overlaps the next propagation matmul).


def gcn_forward(x, adj_p, *params, num_layers, n, f_in, f_out, n_pad, dims_pad,
                compute_dtype, vmem_limit_bytes, flops, bytes_accessed):
    """Fused multi-layer dense GCN forward: one pallas_call for all layers.

    `adj_p` and `params` (per-layer padded W then per-layer padded b) are the
    pre-padded / pre-cast constants built once at model init.
    """
    ws_p = params[:num_layers]
    bs_p = params[num_layers:]

    # Only x changes per call: pad to [n_pad, dims_pad[0]] and cast.
    x_p = jnp.zeros((n_pad, dims_pad[0]), compute_dtype)
    x_p = x_p.at[:n, :f_in].set(x.astype(compute_dtype))

    kernel = functools.partial(_gcn_fused_kernel, num_layers=num_layers,
                               compute_dtype=compute_dtype)
    in_specs = (
        [pl.BlockSpec((n_pad, dims_pad[0]), lambda: (0, 0)),
         pl.BlockSpec((n_pad, n_pad), lambda: (0, 0))]
        + [pl.BlockSpec(w.shape, lambda: (0, 0)) for w in ws_p]
        + [pl.BlockSpec(b.shape, lambda: (0, 0)) for b in bs_p])

    out_p = pl.pallas_call(
        kernel,
        out_shape=jax.ShapeDtypeStruct((n_pad, dims_pad[-1]), jnp.float32),
        in_specs=in_specs,
        out_specs=pl.BlockSpec((n_pad, dims_pad[-1]), lambda: (0, 0)),
        compiler_params=pltpu.CompilerParams(vmem_limit_bytes=vmem_limit_bytes),
        cost_estimate=pl.CostEstimate(flops=int(flops), transcendentals=0,
                                      bytes_accessed=int(bytes_accessed)),
    )(x_p, adj_p, *ws_p, *bs_p)

    return out_p[:n, :f_out]


class GCN:
    """JAX/Pallas port of the dense (sparse=False) GCN module, eval mode."""

    def __init__(self, in_channels, hidden_channels, out_channels, num_layers,
                 dropout, dropout_adj, Adj, key, compute_dtype=jnp.bfloat16):
        self.dropout = dropout              # identity in eval mode
        self.dropout_adj_p = dropout_adj    # identity in eval mode
        self.Adj = Adj
        self.compute_dtype = compute_dtype

        dims = ([in_channels]
                + [hidden_channels] * (num_layers - 1)
                + [out_channels])
        # nn.Linear default init — f32 master copies.
        self.weights, self.biases = [], []
        for i in range(num_layers):
            fan_in, fan_out = dims[i], dims[i + 1]
            key, kw, kb = jax.random.split(key, 3)
            bound = 1.0 / (fan_in ** 0.5)
            self.weights.append(jax.random.uniform(
                kw, (fan_in, fan_out), jnp.float32, minval=-bound, maxval=bound))
            self.biases.append(jax.random.uniform(
                kb, (fan_out,), jnp.float32, minval=-bound, maxval=bound))

        # ------ One-time padding / casting of all constant operands --------
        n = Adj.shape[0]
        itemsize = jnp.dtype(compute_dtype).itemsize
        align = _feature_alignment(dims)
        dims_pad = tuple(_round_up(d, align) for d in dims)   # per-layer widths
        n_pad = _round_up(n, 128)

        adj_p = jnp.zeros((n_pad, n_pad), compute_dtype)
        self.adj_p = adj_p.at[:n, :n].set(Adj.astype(compute_dtype))
        self.ws_p, self.bs_p = [], []
        for i, (w, b) in enumerate(zip(self.weights, self.biases)):
            fi, fo = w.shape
            wp = jnp.zeros((dims_pad[i], dims_pad[i + 1]), compute_dtype)
            self.ws_p.append(wp.at[:fi, :fo].set(w.astype(compute_dtype)))
            bp = jnp.zeros((1, dims_pad[i + 1]), jnp.float32)
            self.bs_p.append(bp.at[0, :fo].set(b))

        # ------ VMEM budget: generation-aware guard + explicit limit --------
        d_max = max(dims_pad)
        working_set = (
            n_pad * n_pad * itemsize                     # Adj
            + n_pad * dims_pad[0] * itemsize             # x
            + sum(w.size * itemsize for w in self.ws_p)  # weights
            + sum(b.size * 4 for b in self.bs_p)         # biases (f32)
            + n_pad * dims_pad[-1] * 4                   # f32 output
            + 2 * n_pad * d_max * 4                      # live f32 intermediates
            + n_pad * d_max * itemsize)                  # bf16 h
        vmem_cap = _tpu_vmem_capacity_bytes()
        budget = vmem_cap // 2                           # ~50% for the fused path
        assert working_set < budget, (
            f"working set {working_set} B exceeds the fused single-tile budget "
            f"{budget} B on this TPU generation; a tiled variant is required")
        # TODO(synk): tiled fallback once Adj outgrows VMEM: grid=(L, N/tm, N/tk)
        # with the layer axis outermost ('arbitrary'), k-reduction last, Adj
        # tiles streamed with pipeline_mode=pl.Buffered(2-3), f32 VMEM
        # accumulator with pl.when init/finalize, per-layer h written back to
        # HBM, and the row-tile axis 'parallel' so v7x's two TensorCores split
        # the rows (tile budgets: ~512-1024 rows on v5e/v6e, about half on v7x).
        vmem_limit = min(max(int(working_set * 2), 16 << 20), int(vmem_cap * 0.9))

        flops = sum(2 * n_pad * dims_pad[i] * dims_pad[i + 1]
                    + 2 * n_pad * n_pad * dims_pad[i + 1]
                    for i in range(num_layers))
        bytes_accessed = (self.adj_p.size * itemsize
                          + n_pad * dims_pad[0] * itemsize
                          + sum(w.size * itemsize for w in self.ws_p)
                          + sum(b.size * 4 for b in self.bs_p)
                          + n_pad * dims_pad[-1] * 4)

        self._forward = jax.jit(functools.partial(
            gcn_forward, num_layers=num_layers, n=n, f_in=in_channels,
            f_out=out_channels, n_pad=n_pad, dims_pad=dims_pad,
            compute_dtype=compute_dtype, vmem_limit_bytes=vmem_limit,
            flops=flops, bytes_accessed=bytes_accessed))

    def __call__(self, x):
        # dropout_adj / dropout are identity in eval mode; the whole forward
        # collapses into one fused Pallas kernel call (jitted with x-padding).
        # TODO(synk): training-mode dropout (on Adj and activations) is not
        # implemented; this kernel covers eval-mode inference only.
        return self._forward(x, self.adj_p, *self.ws_p, *self.bs_p)


if __name__ == "__main__":
    key = jax.random.PRNGKey(0)
    k_x, k_adj, k_params = jax.random.split(key, 3)

    N = 64              # number of nodes
    in_channels = 16
    hidden_channels = 32
    out_channels = 8
    num_layers = 3

    x = jax.random.normal(k_x, (N, in_channels), jnp.float32)

    # Deterministic dense "normalized" adjacency: random nonneg + self loops,
    # row-normalized.
    a_raw = jax.random.uniform(k_adj, (N, N), jnp.float32)
    a_raw = a_raw + jnp.eye(N, dtype=jnp.float32)
    adj = a_raw / jnp.sum(a_raw, axis=1, keepdims=True)

    model = GCN(in_channels, hidden_channels, out_channels, num_layers,
                dropout=0.5, dropout_adj=0.25, Adj=adj, key=k_params)

    out = model(x)
    jax.block_until_ready(out)
    assert out.shape == (N, out_channels)
    assert bool(jnp.all(jnp.isfinite(out)))
    print("KERNEL_OK")
</pallas_src>

<mosaic_0001>
module attributes {stable_mosaic.version = 11 : i64} {
  func.func @_gcn_fused_kernel(%arg0: memref<128x128xbf16, #tpu.memory_space<vmem>>, %arg1: memref<128x128xbf16, #tpu.memory_space<vmem>>, %arg2: memref<128x128xbf16, #tpu.memory_space<vmem>>, %arg3: memref<128x128xbf16, #tpu.memory_space<vmem>>, %arg4: memref<128x128xbf16, #tpu.memory_space<vmem>>, %arg5: memref<1x128xf32, #tpu.memory_space<vmem>>, %arg6: memref<1x128xf32, #tpu.memory_space<vmem>>, %arg7: memref<1x128xf32, #tpu.memory_space<vmem>>, %arg8: memref<128x128xf32, #tpu.memory_space<vmem>>) attributes {dimension_semantics = [], scalar_prefetch = 0 : i64, scratch_operands = 0 : i64, tpu.core_type = #tpu.core_type<tc>} {
    %c0 = arith.constant 0 : index
    %c0_0 = arith.constant 0 : index
    %0 = vector.load %arg1[%c0, %c0_0] : memref<128x128xbf16, #tpu.memory_space<vmem>>, vector<128x128xbf16>
    %c0_1 = arith.constant 0 : index
    %c0_2 = arith.constant 0 : index
    %1 = vector.load %arg0[%c0_1, %c0_2] : memref<128x128xbf16, #tpu.memory_space<vmem>>, vector<128x128xbf16>
    %c0_3 = arith.constant 0 : index
    %c0_4 = arith.constant 0 : index
    %2 = vector.load %arg2[%c0_3, %c0_4] : memref<128x128xbf16, #tpu.memory_space<vmem>>, vector<128x128xbf16>
    %cst = arith.constant dense<0.000000e+00> : vector<128x128xf32>
    %3 = tpu.matmul %1, %2, %cst {dimension_numbers = #tpu.dot_dimension_numbers<[1], [0], [0], [1], [0, 0, 1, 1], [], []>} : vector<128x128xbf16>, vector<128x128xbf16>, vector<128x128xf32> -> vector<128x128xf32>
    %c0_5 = arith.constant 0 : index
    %c0_6 = arith.constant 0 : index
    %4 = vector.load %arg5[%c0_5, %c0_6] : memref<1x128xf32, #tpu.memory_space<vmem>>, vector<1x128xf32>
    %5 = vector.broadcast %4 : vector<1x128xf32> to vector<128x128xf32>
    %6 = arith.addf %3, %5 : vector<128x128xf32>
    %7 = arith.truncf %6 : vector<128x128xf32> to vector<128x128xbf16>
    %cst_7 = arith.constant dense<0.000000e+00> : vector<128x128xf32>
    %8 = tpu.matmul %0, %7, %cst_7 {dimension_numbers = #tpu.dot_dimension_numbers<[1], [0], [0], [1], [0, 0, 1, 1], [], []>} : vector<128x128xbf16>, vector<128x128xbf16>, vector<128x128xf32> -> vector<128x128xf32>
    %cst_8 = arith.constant 0.000000e+00 : f32
    %9 = vector.broadcast %cst_8 : f32 to vector<128x128xf32>
    %10 = arith.maximumf %8, %9 : vector<128x128xf32>
    %11 = arith.truncf %10 : vector<128x128xf32> to vector<128x128xbf16>
    %c0_9 = arith.constant 0 : index
    %c0_10 = arith.constant 0 : index
    %12 = vector.load %arg3[%c0_9, %c0_10] : memref<128x128xbf16, #tpu.memory_space<vmem>>, vector<128x128xbf16>
    %cst_11 = arith.constant dense<0.000000e+00> : vector<128x128xf32>
    %13 = tpu.matmul %11, %12, %cst_11 {dimension_numbers = #tpu.dot_dimension_numbers<[1], [0], [0], [1], [0, 0, 1, 1], [], []>} : vector<128x128xbf16>, vector<128x128xbf16>, vector<128x128xf32> -> vector<128x128xf32>
    %c0_12 = arith.constant 0 : index
    %c0_13 = arith.constant 0 : index
    %14 = vector.load %arg6[%c0_12, %c0_13] : memref<1x128xf32, #tpu.memory_space<vmem>>, vector<1x128xf32>
    %15 = vector.broadcast %14 : vector<1x128xf32> to vector<128x128xf32>
    %16 = arith.addf %13, %15 : vector<128x128xf32>
    %17 = arith.truncf %16 : vector<128x128xf32> to vector<128x128xbf16>
    %cst_14 = arith.constant dense<0.000000e+00> : vector<128x128xf32>
    %18 = tpu.matmul %0, %17, %cst_14 {dimension_numbers = #tpu.dot_dimension_numbers<[1], [0], [0], [1], [0, 0, 1, 1], [], []>} : vector<128x128xbf16>, vector<128x128xbf16>, vector<128x128xf32> -> vector<128x128xf32>
    %cst_15 = arith.constant 0.000000e+00 : f32
    %19 = vector.broadcast %cst_15 : f32 to vector<128x128xf32>
    %20 = arith.maximumf %18, %19 : vector<128x128xf32>
    %21 = arith.truncf %20 : vector<128x128xf32> to vector<128x128xbf16>
    %c0_16 = arith.constant 0 : index
    %c0_17 = arith.constant 0 : index
    %22 = vector.load %arg4[%c0_16, %c0_17] : memref<128x128xbf16, #tpu.memory_space<vmem>>, vector<128x128xbf16>
    %cst_18 = arith.constant dense<0.000000e+00> : vector<128x128xf32>
    %23 = tpu.matmul %21, %22, %cst_18 {dimension_numbers = #tpu.dot_dimension_numbers<[1], [0], [0], [1], [0, 0, 1, 1], [], []>} : vector<128x128xbf16>, vector<128x128xbf16>, vector<128x128xf32> -> vector<128x128xf32>
    %c0_19 = arith.constant 0 : index
    %c0_20 = arith.constant 0 : index
    %24 = vector.load %arg7[%c0_19, %c0_20] : memref<1x128xf32, #tpu.memory_space<vmem>>, vector<1x128xf32>
    %25 = vector.broadcast %24 : vector<1x128xf32> to vector<128x128xf32>
    %26 = arith.addf %23, %25 : vector<128x128xf32>
    %27 = arith.truncf %26 : vector<128x128xf32> to vector<128x128xbf16>
    %cst_21 = arith.constant dense<0.000000e+00> : vector<128x128xf32>
    %28 = tpu.matmul %0, %27, %cst_21 {dimension_numbers = #tpu.dot_dimension_numbers<[1], [0], [0], [1], [0, 0, 1, 1], [], []>} : vector<128x128xbf16>, vector<128x128xbf16>, vector<128x128xf32> -> vector<128x128xf32>
    %c0_22 = arith.constant 0 : index
    %c0_23 = arith.constant 0 : index
    %29 = vector.load %arg8[%c0_22, %c0_23] : memref<128x128xf32, #tpu.memory_space<vmem>>, vector<128x128xf32>
    tpu.vector_store %arg8[%c0_22, %c0_23], %28 {strides = array<i32>} : memref<128x128xf32, #tpu.memory_space<vmem>>, vector<128x128xf32>,
    return
  }
}

</mosaic_0001>

<bundles_post_ra>
// kernel: gcn_forward.1
= control target key start
LH: loop header
LB: loop body
LE: loop exit
PB: predicated region body
PF: predicated region fallthrough
CT: control target
= control target key end

     0   :  { %13 = vsyncpa [#allocation3], 0  ;;  %s1718_s0 = inlined_call_operand.vmem [shape: bf16[128,128], index: 0, kind: input, shape index: {}]   ;;  %s1719_s1 = inlined_call_operand.vmem [shape: bf16[128,128], index: 1, kind: input, shape index: {}]   ;;  %s1720_s2 = inlined_call_operand.vmem [shape: bf16[128,128], index: 2, kind: input, shape index: {}]   ;;  %s1721_s3 = inlined_call_operand.hbm [shape: bf16[128,128], index: 3, kind: input, shape index: {}]   ;;  %s1722_s4 = inlined_call_operand.hbm [shape: bf16[128,128], index: 4, kind: input, shape index: {}]   ;;  %s1723_s5 = inlined_call_operand.vmem [shape: f32[1,128], index: 5, kind: input, shape index: {}]   ;;  %s1724_s6 = inlined_call_operand.vmem [shape: f32[1,128], index: 6, kind: input, shape index: {}]   ;;  %s1725_s7 = inlined_call_operand.vmem [shape: f32[1,128], index: 7, kind: input, shape index: {}]   ;;  %s1726_s8 = inlined_call_operand.vmem [shape: f32[128,128], index: 8, kind: output, shape index: {}]  }
   0x1   :  { %14 = vsyncpa [#allocation5], 0  ;;  %s1494_s27 = smov [#allocation2]  }
   0x2   :  { %s26_s28 = sshll.u32 %s1494_s27, 4  ;;  %s27_s28 = int_to_ptr.vmem [resolvable:$true] %s26_s28 }
   0x3   :  { %s1458_s29 = scalar_lea.vmem %s27_s28, 1024  ;;  %p1463_p1 = scmp.lt.s32.totalorder %s27_s28, %s27_s28 }
   0x4   :  { %p1459_p0 = scmp.ne.s32.totalorder %s27_s28, %s1458_s29  ;;  %p1464_p2 = scmp.lt.s32.totalorder %s1458_s29, %s1458_s29 }
   0x6   :  { %p1465_p3 = por %p1464_p2, %p1463_p1 }
   0x8   :  { %p1466_p4 = pnand %p1465_p3, %p1459_p0 }
   0xa   :  { %1469 = shalt.err (!%p1466_p4)
}
   0xb   :  { %s1495_s30 = smov 64   ;;  %s1496_s9 = smov 4  }
   0xc   :  { %32 = dma.hbm_to_vmem [thread:$0]  %s1721_s3, 1024, %s27_s28, [#allocation3], %s1495_s30, %s1495_s30, %s1496_s9  }
   0xd   :  { %s1497_s12 = smov [#allocation4]  }
   0xe   :  { %s38_s13 = sshll.u32 %s1497_s12, 4  ;;  %s39_s13 = int_to_ptr.vmem [resolvable:$true] %s38_s13 }
   0xf   :  { %s1478_s14 = scalar_lea.vmem %s39_s13, 1024  ;;  %p1483_p6 = scmp.lt.s32.totalorder %s39_s13, %s39_s13 }
  0x10   :  { %p1479_p5 = scmp.ne.s32.totalorder %s39_s13, %s1478_s14  ;;  %p1484_p7 = scmp.lt.s32.totalorder %s1478_s14, %s1478_s14 }
  0x12   :  { %p1485_p8 = por %p1484_p7, %p1483_p6 }
  0x14   :  { %p1486_p9 = pnand %p1485_p8, %p1479_p5 }
  0x16   :  { %1489 = shalt.err (!%p1486_p9)
}
  0x17   :  { %44 = dma.hbm_to_vmem [thread:$0]  %s1722_s4, 1024, %s39_s13, [#allocation5], %s1495_s30, %s1495_s30, %s1496_s9  }
  0x18   :  { %1490 = dma.done.wait [#allocation3], 1024  }
  0x19   :  { %1491 = vsyncadd [#allocation3], 4294966272 }
  0x1a   :  { %1492 = dma.done.wait [#allocation5], 1024  }
  0x1b   :  { %1493 = vsyncadd [#allocation5], 4294966272  ;;  %v1410_v0 = vld [vmem:[%s1720_s2 + $0x38] sm:$0xff]   ;;  %v1411_v1 = vld [vmem:[%s1720_s2 + $0x30] sm:$0xff]  }
  0x1c   :  { %1214 = vmatprep.subr.bf16.mxu0 %v1410_v0  ;;  %v1412_v2 = vld [vmem:[%s1720_s2 + $0x28] sm:$0xff]   ;;  %v1413_v3 = vld [vmem:[%s1720_s2 + $0x20] sm:$0xff]   ;;  %v1414_v5 = vld [vmem:[%s1720_s2 + $0x18] sm:$0xff]  }
  0x1d   :  { %1215 = vmatpush3.bf16.msra.mxu0 %v1410_v0  ;;  %v1418_v4 = vld [vmem:[%s1718_s0] sm:$0xff]   ;;  %v1415_v6 = vld [vmem:[%s1720_s2 + $0x10] sm:$0xff]   ;;  %v1416_v7 = vld [vmem:[%s1720_s2 + $0x8] sm:$0xff]  }
  0x1e   :  { %1216 = vmatprep.subr.bf16.mxu0 %v1411_v1  ;;  %1230 = vmatprep.mubr.bf16.mxu0 %v1418_v4  ;;  %v1417_v8 = vld [vmem:[%s1720_s2] sm:$0xff]   ;;  %v1419_v9 = vld [vmem:[%s1718_s0 + $0x8] sm:$0xff]   ;;  %v1420_v10 = vld [vmem:[%s1718_s0 + $0x10] sm:$0xff]  }
  0x1f   :  { %v1421_v11 = vld [vmem:[%s1718_s0 + $0x18] sm:$0xff]   ;;  %v1422_v12 = vld [vmem:[%s1718_s0 + $0x20] sm:$0xff]   ;;  %v1423_v13 = vld [vmem:[%s1718_s0 + $0x28] sm:$0xff]  }
  0x20   :  { %v1424_v14 = vld [vmem:[%s1718_s0 + $0x30] sm:$0xff]   ;;  %v1425_v15 = vld [vmem:[%s1718_s0 + $0x38] sm:$0xff]   ;;  %v1600_v16 = vld [vmem:[%s1719_s1] sm:$0xff]  }
  0x21   :  { %1217 = vmatpush3.bf16.msra.mxu0 %v1411_v1  ;;  %1262 = vmatprep.mubr.bf16.mxu1 %v1600_v16  ;;  %v1434_v17 = vld [vmem:[#allocation2 + $0x38] sm:$0xff]   ;;  %v1435_v18 = vld [vmem:[#allocation2 + $0x30] sm:$0xff]   ;;  %v1436_v19 = vld [vmem:[#allocation2 + $0x28] sm:$0xff]  }
  0x22   :  { %1218 = vmatprep.subr.bf16.mxu0 %v1412_v2  ;;  %v1437_v20 = vld [vmem:[#allocation2 + $0x20] sm:$0xff]   ;;  %v1438_v21 = vld [vmem:[#allocation2 + $0x18] sm:$0xff]   ;;  %v1609_v63 = vld [vmem:[%s1719_s1 + $0x8] sm:$0xff]  }
  0x23   :  { %v1075_v36 = vld [vmem:[%s1723_s5] ss:$0 sm:$0xff]  ;;  %v1614_v0 = vld [vmem:[%s1719_s1 + $0x10] sm:$0xff]   ;;  %v1621_v1 = vld [vmem:[%s1719_s1 + $0x18] sm:$0xff]  }
  0x24   :  { %v1638_v4 = vld [vmem:[%s1719_s1 + $0x30] sm:$0xff]  }
  0x25   :  { %1219 = vmatpush3.bf16.msra.mxu0 %v1412_v2  ;;  %v1626_v2 = vld [vmem:[%s1719_s1 + $0x20] sm:$0xff]  }
  0x26   :  { %1220 = vmatprep.subr.bf16.mxu0 %v1413_v3 }
  0x29   :  { %1221 = vmatpush3.bf16.msra.mxu0 %v1413_v3  ;;  %v1633_v3 = vld [vmem:[%s1719_s1 + $0x28] sm:$0xff]  }
  0x2a   :  { %1222 = vmatprep.subr.bf16.mxu0 %v1414_v5 }
  0x2d   :  { %1223 = vmatpush3.bf16.msra.mxu0 %v1414_v5  ;;  %v1645_v5 = vld [vmem:[%s1719_s1 + $0x38] sm:$0xff]  }
  0x2e   :  { %1224 = vmatprep.subr.bf16.mxu0 %v1415_v6 }
  0x31   :  { %1225 = vmatpush3.bf16.msra.mxu0 %v1415_v6  ;;  %v1439_v6 = vld [vmem:[#allocation2 + $0x10] sm:$0xff]  }
  0x32   :  { %1226 = vmatprep.subr.bf16.mxu0 %v1416_v7 }
  0x35   :  { %1227 = vmatpush3.bf16.msra.mxu0 %v1416_v7  ;;  %v1440_v7 = vld [vmem:[#allocation2 + $0x8] sm:$0xff]  }
  0x36   :  { %1228 = vmatprep.subr.bf16.mxu0 %v1417_v8 }
  0x39   :  { %1229 = vmatpush3.bf16.msra.mxu0 %v1417_v8  ;;  %v1441_v8 = vld [vmem:[#allocation2] sm:$0xff]  }
  0x3a   :  { %1278 = vmatprep.subr.bf16.mxu0 %v1434_v17 }
  0x3c   :  { %1231 = vmatmul.mubr.bf16.vlgmr.msra.gmra.mxu0 %v1419_v9 }
  0x3d   :  { %1234 = vmatprep.mubr.bf16.mxu0 %v1420_v10  ;;  %1279 = vmatpush3.bf16.msra.mxu0 %v1434_v17 }
  0x3e   :  { %1280 = vmatprep.subr.bf16.mxu0 %v1435_v18 }
  0x41   :  { %1281 = vmatpush3.bf16.msra.mxu0 %v1435_v18 }
  0x42   :  { %1282 = vmatprep.subr.bf16.mxu0 %v1436_v19 }
  0x44   :  { %1235 = vmatmul.mubr.bf16.gmra.mxu0 %v1421_v11 }
  0x45   :  { %1238 = vmatprep.mubr.bf16.mxu0 %v1422_v12  ;;  %1283 = vmatpush3.bf16.msra.mxu0 %v1436_v19 }
  0x46   :  { %1284 = vmatprep.subr.bf16.mxu0 %v1437_v20 }
  0x49   :  { %1285 = vmatpush3.bf16.msra.mxu0 %v1437_v20 }
  0x4a   :  { %1286 = vmatprep.subr.bf16.mxu0 %v1438_v21 }
  0x4c   :  { %1239 = vmatmul.mubr.bf16.gmra.mxu0 %v1423_v13 }
  0x4d   :  { %1242 = vmatprep.mubr.bf16.mxu0 %v1424_v14  ;;  %1287 = vmatpush3.bf16.msra.mxu0 %v1438_v21 }
  0x4e   :  { %1288 = vmatprep.subr.bf16.mxu0 %v1439_v6 }
  0x51   :  { %1289 = vmatpush3.bf16.msra.mxu0 %v1439_v6 }
  0x52   :  { %1290 = vmatprep.subr.bf16.mxu0 %v1440_v7 }
  0x54   :  { %1243 = vmatmul.mubr.bf16.gmra.mxu0 %v1425_v15 }
  0x55   :  { %1291 = vmatpush3.bf16.msra.mxu0 %v1440_v7 }
  0x56   :  { %1292 = vmatprep.subr.bf16.mxu0 %v1441_v8 }
  0x59   :  { %1293 = vmatpush3.bf16.msra.mxu0 %v1441_v8 }
  0xfc   :  { %v1232_v22 = vpop.f32.mrf.mxu0 }
  0xfd   :  { %v252_v58 = vadd.f32 %v1232_v22, %v1075_v36 }
  0xfe   :  { %v243_v23 = vpop.f32.mrf.mxu0 }
  0xff   :  { %v244_v61 = vadd.f32 %v1075_v36, %v243_v23 }
 0x100   :  { %v1233_v24 = vpop.f32.mrf.mxu0 }
 0x101   :  { %v255_v56 = vadd.f32 %v1233_v24, %v1075_v36 }
 0x102   :  { %v246_v25 = vpop.f32.mrf.mxu0 }
 0x103   :  { %v307_v59 = vpack.c.bf16 %v255_v56, %v252_v58  ;;  %v247_v60 = vadd.f32 %v1075_v36, %v246_v25 }
 0x104   :  { %v1236_v26 = vpop.f32.mrf.mxu0 }
 0x105   :  { %v268_v52 = vadd.f32 %v1236_v26, %v1075_v36  ;;  %v306_v62 = vpack.c.bf16 %v247_v60, %v244_v61 }
 0x106   :  { %v259_v27 = vpop.f32.mrf.mxu0 }
 0x107   :  { %v260_v55 = vadd.f32 %v1075_v36, %v259_v27 }
 0x108   :  { %v1237_v28 = vpop.f32.mrf.mxu0 }
 0x109   :  { %v271_v50 = vadd.f32 %v1237_v28, %v1075_v36 }
 0x10a   :  { %v262_v29 = vpop.f32.mrf.mxu0 }
 0x10b   :  { %v309_v53 = vpack.c.bf16 %v271_v50, %v268_v52  ;;  %v263_v54 = vadd.f32 %v1075_v36, %v262_v29  ;;  %v1442_v50 = vld [vmem:[#allocation4 + $0x38] sm:$0xff]   ;;  %v1444_v52 = vld [vmem:[#allocation4 + $0x28] sm:$0xff]  }
 0x10c   :  { %v1240_v30 = vpop.f32.mrf.mxu0  ;;  %1342 = vmatprep.subr.bf16.mxu0 %v1442_v50 }
 0x10d   :  { %v284_v46 = vadd.f32 %v1240_v30, %v1075_v36  ;;  %v308_v57 = vpack.c.bf16 %v263_v54, %v260_v55  ;;  %v1446_v54 = vld [vmem:[#allocation4 + $0x18] sm:$0xff]  }
 0x10e   :  { %v275_v31 = vpop.f32.mrf.mxu0 }
 0x10f   :  { %v276_v49 = vadd.f32 %v1075_v36, %v275_v31 }
 0x110   :  { %v1241_v32 = vpop.f32.mrf.mxu0 }
 0x111   :  { %v287_v44 = vadd.f32 %v1241_v32, %v1075_v36 }
 0x112   :  { %v278_v33 = vpop.f32.mrf.mxu0 }
 0x113   :  { %v311_v47 = vpack.c.bf16 %v287_v44, %v284_v46  ;;  %v279_v48 = vadd.f32 %v1075_v36, %v278_v33 }
 0x114   :  { %v1244_v34 = vpop.f32.mrf.mxu0 }
 0x115   :  { %v300_v38 = vadd.f32 %v1244_v34, %v1075_v36  ;;  %v310_v51 = vpack.c.bf16 %v279_v48, %v276_v49 }
 0x116   :  { %v291_v35 = vpop.f32.mrf.mxu0 }
 0x117   :  { %v292_v41 = vadd.f32 %v1075_v36, %v291_v35 }
 0x118   :  { %v1245_v37 = vpop.f32.mrf.mxu0 }
 0x119   :  { %v303_v39 = vadd.f32 %v1245_v37, %v1075_v36 }
 0x11a   :  { %v294_v40 = vpop.f32.mrf.mxu0 }
 0x11b   :  { %v295_v42 = vadd.f32 %v1075_v36, %v294_v40  ;;  %v313_v43 = vpack.c.bf16 %v303_v39, %v300_v38 }
 0x11d   :  { %v312_v45 = vpack.c.bf16 %v295_v42, %v292_v41  ;;  %1246 = vmatprep.subr.bf16.mxu1 %v313_v43 }
 0x11e   :  { %1247 = vmatpush3.bf16.msra.mxu1 %v313_v43 }
 0x11f   :  { %1248 = vmatprep.subr.bf16.mxu1 %v312_v45 }
 0x122   :  { %1249 = vmatpush3.bf16.msra.mxu1 %v312_v45 }
 0x123   :  { %1250 = vmatprep.subr.bf16.mxu1 %v311_v47 }
 0x126   :  { %1251 = vmatpush3.bf16.msra.mxu1 %v311_v47 }
 0x127   :  { %1252 = vmatprep.subr.bf16.mxu1 %v310_v51 }
 0x12a   :  { %1253 = vmatpush3.bf16.msra.mxu1 %v310_v51  ;;  %v1443_v51 = vld [vmem:[#allocation4 + $0x30] sm:$0xff]  }
 0x12b   :  { %1254 = vmatprep.subr.bf16.mxu1 %v309_v53 }
 0x12e   :  { %1255 = vmatpush3.bf16.msra.mxu1 %v309_v53  ;;  %v1445_v53 = vld [vmem:[#allocation4 + $0x20] sm:$0xff]  }
 0x12f   :  { %1256 = vmatprep.subr.bf16.mxu1 %v308_v57 }
 0x132   :  { %1257 = vmatpush3.bf16.msra.mxu1 %v308_v57 }
 0x133   :  { %1258 = vmatprep.subr.bf16.mxu1 %v307_v59 }
 0x136   :  { %1259 = vmatpush3.bf16.msra.mxu1 %v307_v59 }
 0x137   :  { %1260 = vmatprep.subr.bf16.mxu1 %v306_v62 }
 0x13a   :  { %1261 = vmatpush3.bf16.msra.mxu1 %v306_v62 }
 0x13d   :  { %1263 = vmatmul.mubr.bf16.vlgmr.msra.gmra.mxu1 %v1609_v63 }
 0x13e   :  { %1266 = vmatprep.mubr.bf16.mxu1 %v1614_v0 }
 0x145   :  { %1267 = vmatmul.mubr.bf16.gmra.mxu1 %v1621_v1 }
 0x146   :  { %1270 = vmatprep.mubr.bf16.mxu1 %v1626_v2 }
 0x14d   :  { %1271 = vmatmul.mubr.bf16.gmra.mxu1 %v1633_v3 }
 0x14e   :  { %1274 = vmatprep.mubr.bf16.mxu1 %v1638_v4 }
 0x155   :  { %1275 = vmatmul.mubr.bf16.gmra.mxu1 %v1645_v5 }
 0x156   :  { %1326 = vmatprep.mubr.bf16.mxu1 %v1600_v16 }
 0x1fd   :  { %v1264_v9 = vpop.f32.mrf.mxu1 }
 0x1fe   :  { %v461_v17 = vmax.f32 %v1264_v9, 0.0 }
 0x1ff   :  { %v396_v10 = vpop.f32.mrf.mxu1 }
 0x200   :  { %v459_v14 = vmax.f32 %v396_v10, 0.0 }
 0x201   :  { %v1265_v11 = vpop.f32.mrf.mxu1 }
 0x202   :  { %v462_v12 = vmax.f32 %v1265_v11, 0.0 }
 0x203   :  { %v399_v13 = vpop.f32.mrf.mxu1 }
 0x204   :  { %v460_v15 = vmax.f32 %v399_v13, 0.0  ;;  %v476_v20 = vpack.c.bf16 %v462_v12, %v461_v17  ;;  %v1100_v12 = vld [vmem:[%s1724_s6] ss:$0 sm:$0xff] }
 0x205   :  { %v1268_v18 = vpop.f32.mrf.mxu1 }
 0x206   :  { %v475_v19 = vpack.c.bf16 %v460_v15, %v459_v14  ;;  %v465_v27 = vmax.f32 %v1268_v18, 0.0 }
 0x207   :  { %v412_v21 = vpop.f32.mrf.mxu1 }
 0x208   :  { %1294 = vmatprep.mubr.bf16.mxu0 %v475_v19  ;;  %v463_v25 = vmax.f32 %v412_v21, 0.0 }
 0x209   :  { %v1269_v22 = vpop.f32.mrf.mxu1  ;;  %1295 = vmatmul.mubr.bf16.vlgmr.msra.gmra.mxu0 %v476_v20 }
 0x20a   :  { %v466_v23 = vmax.f32 %v1269_v22, 0.0  ;;  %1343 = vmatpush3.bf16.msra.mxu0 %v1442_v50 }
 0x20b   :  { %v415_v24 = vpop.f32.mrf.mxu1  ;;  %1344 = vmatprep.subr.bf16.mxu0 %v1443_v51 }
 0x20c   :  { %v464_v26 = vmax.f32 %v415_v24, 0.0  ;;  %v478_v30 = vpack.c.bf16 %v466_v23, %v465_v27 }
 0x20d   :  { %v1272_v28 = vpop.f32.mrf.mxu1 }
 0x20e   :  { %v477_v29 = vpack.c.bf16 %v464_v26, %v463_v25  ;;  %v469_v37 = vmax.f32 %v1272_v28, 0.0  ;;  %1345 = vmatpush3.bf16.msra.mxu0 %v1443_v51 }
 0x20f   :  { %v428_v31 = vpop.f32.mrf.mxu1  ;;  %1346 = vmatprep.subr.bf16.mxu0 %v1444_v52 }
 0x210   :  { %1298 = vmatprep.mubr.bf16.mxu0 %v477_v29  ;;  %v467_v35 = vmax.f32 %v428_v31, 0.0 }
 0x211   :  { %v1273_v32 = vpop.f32.mrf.mxu1  ;;  %1299 = vmatmul.mubr.bf16.gmra.mxu0 %v478_v30 }
 0x212   :  { %v470_v33 = vmax.f32 %v1273_v32, 0.0  ;;  %1347 = vmatpush3.bf16.msra.mxu0 %v1444_v52 }
 0x213   :  { %v431_v34 = vpop.f32.mrf.mxu1  ;;  %1348 = vmatprep.subr.bf16.mxu0 %v1445_v53 }
 0x214   :  { %v468_v36 = vmax.f32 %v431_v34, 0.0  ;;  %v480_v40 = vpack.c.bf16 %v470_v33, %v469_v37 }
 0x215   :  { %v1276_v38 = vpop.f32.mrf.mxu1 }
 0x216   :  { %v479_v39 = vpack.c.bf16 %v468_v36, %v467_v35  ;;  %v473_v47 = vmax.f32 %v1276_v38, 0.0  ;;  %1349 = vmatpush3.bf16.msra.mxu0 %v1445_v53 }
 0x217   :  { %v444_v41 = vpop.f32.mrf.mxu1  ;;  %1350 = vmatprep.subr.bf16.mxu0 %v1446_v54 }
 0x218   :  { %1302 = vmatprep.mubr.bf16.mxu0 %v479_v39  ;;  %v471_v45 = vmax.f32 %v444_v41, 0.0  ;;  %v1448_v41 = vld [vmem:[#allocation4 + $0x8] sm:$0xff]  }
 0x219   :  { %v1277_v42 = vpop.f32.mrf.mxu1  ;;  %1303 = vmatmul.mubr.bf16.gmra.mxu0 %v480_v40  ;;  %v1447_v40 = vld [vmem:[#allocation4 + $0x10] sm:$0xff]  }
 0x21a   :  { %v474_v43 = vmax.f32 %v1277_v42, 0.0  ;;  %1351 = vmatpush3.bf16.msra.mxu0 %v1446_v54  ;;  %v1449_v42 = vld [vmem:[#allocation4] sm:$0xff]  }
 0x21b   :  { %v447_v44 = vpop.f32.mrf.mxu1  ;;  %1352 = vmatprep.subr.bf16.mxu0 %v1447_v40 }
 0x21c   :  { %v472_v46 = vmax.f32 %v447_v44, 0.0  ;;  %v482_v49 = vpack.c.bf16 %v474_v43, %v473_v47 }
 0x21e   :  { %v481_v48 = vpack.c.bf16 %v472_v46, %v471_v45  ;;  %1353 = vmatpush3.bf16.msra.mxu0 %v1447_v40  ;;  %v1109_v40 = vld [vmem:[%s1725_s7] ss:$0 sm:$0xff] }
 0x21f   :  { %1354 = vmatprep.subr.bf16.mxu0 %v1448_v41 }
 0x220   :  { %1306 = vmatprep.mubr.bf16.mxu0 %v481_v48 }
 0x221   :  { %1307 = vmatmul.mubr.bf16.gmra.mxu0 %v482_v49 }
 0x222   :  { %1355 = vmatpush3.bf16.msra.mxu0 %v1448_v41 }
 0x223   :  { %1356 = vmatprep.subr.bf16.mxu0 %v1449_v42 }
 0x226   :  { %1357 = vmatpush3.bf16.msra.mxu0 %v1449_v42 }
 0x2c9   :  { %v1296_v55 = vpop.f32.mrf.mxu0 }
 0x2ca   :  { %v597_v35 = vadd.f32 %v1296_v55, %v1100_v12 }
 0x2cb   :  { %v588_v56 = vpop.f32.mrf.mxu0 }
 0x2cc   :  { %v589_v38 = vadd.f32 %v1100_v12, %v588_v56 }
 0x2cd   :  { %v1297_v57 = vpop.f32.mrf.mxu0 }
 0x2ce   :  { %v600_v33 = vadd.f32 %v1297_v57, %v1100_v12 }
 0x2cf   :  { %v591_v58 = vpop.f32.mrf.mxu0 }
 0x2d0   :  { %v652_v36 = vpack.c.bf16 %v600_v33, %v597_v35  ;;  %v592_v37 = vadd.f32 %v1100_v12, %v591_v58 }
 0x2d1   :  { %v1300_v59 = vpop.f32.mrf.mxu0 }
 0x2d2   :  { %v613_v29 = vadd.f32 %v1300_v59, %v1100_v12  ;;  %v651_v39 = vpack.c.bf16 %v592_v37, %v589_v38 }
 0x2d3   :  { %v604_v60 = vpop.f32.mrf.mxu0 }
 0x2d4   :  { %v605_v32 = vadd.f32 %v1100_v12, %v604_v60 }
 0x2d5   :  { %v1301_v61 = vpop.f32.mrf.mxu0 }
 0x2d6   :  { %v616_v27 = vadd.f32 %v1301_v61, %v1100_v12 }
 0x2d7   :  { %v607_v62 = vpop.f32.mrf.mxu0 }
 0x2d8   :  { %v654_v30 = vpack.c.bf16 %v616_v27, %v613_v29  ;;  %v608_v31 = vadd.f32 %v1100_v12, %v607_v62 }
 0x2d9   :  { %v1304_v6 = vpop.f32.mrf.mxu0 }
 0x2da   :  { %v629_v23 = vadd.f32 %v1304_v6, %v1100_v12  ;;  %v653_v34 = vpack.c.bf16 %v608_v31, %v605_v32 }
 0x2db   :  { %v620_v7 = vpop.f32.mrf.mxu0 }
 0x2dc   :  { %v621_v26 = vadd.f32 %v1100_v12, %v620_v7 }
 0x2dd   :  { %v1305_v8 = vpop.f32.mrf.mxu0 }
 0x2de   :  { %v632_v21 = vadd.f32 %v1305_v8, %v1100_v12 }
 0x2df   :  { %v623_v9 = vpop.f32.mrf.mxu0 }
 0x2e0   :  { %v656_v24 = vpack.c.bf16 %v632_v21, %v629_v23  ;;  %v624_v25 = vadd.f32 %v1100_v12, %v623_v9 }
 0x2e1   :  { %v1308_v10 = vpop.f32.mrf.mxu0 }
 0x2e2   :  { %v645_v14 = vadd.f32 %v1308_v10, %v1100_v12  ;;  %v655_v28 = vpack.c.bf16 %v624_v25, %v621_v26 }
 0x2e3   :  { %v636_v11 = vpop.f32.mrf.mxu0 }
 0x2e4   :  { %v637_v18 = vadd.f32 %v1100_v12, %v636_v11 }
 0x2e5   :  { %v1309_v13 = vpop.f32.mrf.mxu0 }
 0x2e6   :  { %v648_v15 = vadd.f32 %v1309_v13, %v1100_v12 }
 0x2e7   :  { %v639_v17 = vpop.f32.mrf.mxu0 }
 0x2e8   :  { %v658_v19 = vpack.c.bf16 %v648_v15, %v645_v14  ;;  %v640_v20 = vadd.f32 %v1100_v12, %v639_v17 }
 0x2ea   :  { %v657_v22 = vpack.c.bf16 %v640_v20, %v637_v18  ;;  %1310 = vmatprep.subr.bf16.mxu1 %v658_v19 }
 0x2eb   :  { %1311 = vmatpush3.bf16.msra.mxu1 %v658_v19 }
 0x2ec   :  { %1312 = vmatprep.subr.bf16.mxu1 %v657_v22 }
 0x2ef   :  { %1313 = vmatpush3.bf16.msra.mxu1 %v657_v22 }
 0x2f0   :  { %1314 = vmatprep.subr.bf16.mxu1 %v656_v24 }
 0x2f3   :  { %1315 = vmatpush3.bf16.msra.mxu1 %v656_v24 }
 0x2f4   :  { %1316 = vmatprep.subr.bf16.mxu1 %v655_v28 }
 0x2f7   :  { %1317 = vmatpush3.bf16.msra.mxu1 %v655_v28 }
 0x2f8   :  { %1318 = vmatprep.subr.bf16.mxu1 %v654_v30 }
 0x2fb   :  { %1319 = vmatpush3.bf16.msra.mxu1 %v654_v30 }
 0x2fc   :  { %1320 = vmatprep.subr.bf16.mxu1 %v653_v34 }
 0x2ff   :  { %1321 = vmatpush3.bf16.msra.mxu1 %v653_v34 }
 0x300   :  { %1322 = vmatprep.subr.bf16.mxu1 %v652_v36 }
 0x303   :  { %1323 = vmatpush3.bf16.msra.mxu1 %v652_v36 }
 0x304   :  { %1324 = vmatprep.subr.bf16.mxu1 %v651_v39 }
 0x307   :  { %1325 = vmatpush3.bf16.msra.mxu1 %v651_v39 }
 0x30a   :  { %1327 = vmatmul.mubr.bf16.vlgmr.msra.gmra.mxu1 %v1609_v63 }
 0x30b   :  { %1330 = vmatprep.mubr.bf16.mxu1 %v1614_v0 }
 0x312   :  { %1331 = vmatmul.mubr.bf16.gmra.mxu1 %v1621_v1 }
 0x313   :  { %1334 = vmatprep.mubr.bf16.mxu1 %v1626_v2 }
 0x31a   :  { %1335 = vmatmul.mubr.bf16.gmra.mxu1 %v1633_v3 }
 0x31b   :  { %1338 = vmatprep.mubr.bf16.mxu1 %v1638_v4 }
 0x322   :  { %1339 = vmatmul.mubr.bf16.gmra.mxu1 %v1645_v5 }
 0x323   :  { %1390 = vmatprep.mubr.bf16.mxu1 %v1600_v16 }
 0x3ca   :  { %v1328_v43 = vpop.f32.mrf.mxu1 }
 0x3cb   :  { %v758_v50 = vmax.f32 %v1328_v43, 0.0 }
 0x3cc   :  { %v693_v44 = vpop.f32.mrf.mxu1 }
 0x3cd   :  { %v756_v48 = vmax.f32 %v693_v44, 0.0 }
 0x3ce   :  { %v1329_v45 = vpop.f32.mrf.mxu1 }
 0x3cf   :  { %v759_v46 = vmax.f32 %v1329_v45, 0.0 }
 0x3d0   :  { %v696_v47 = vpop.f32.mrf.mxu1 }
 0x3d1   :  { %v757_v49 = vmax.f32 %v696_v47, 0.0  ;;  %v773_v16 = vpack.c.bf16 %v759_v46, %v758_v50 }
 0x3d2   :  { %v1332_v51 = vpop.f32.mrf.mxu1 }
 0x3d3   :  { %v772_v52 = vpack.c.bf16 %v757_v49, %v756_v48  ;;  %v762_v59 = vmax.f32 %v1332_v51, 0.0 }
 0x3d4   :  { %v709_v53 = vpop.f32.mrf.mxu1 }
 0x3d5   :  { %1358 = vmatprep.mubr.bf16.mxu0 %v772_v52  ;;  %v760_v57 = vmax.f32 %v709_v53, 0.0 }
 0x3d6   :  { %v1333_v54 = vpop.f32.mrf.mxu1  ;;  %1359 = vmatmul.mubr.bf16.vlgmr.msra.gmra.mxu0 %v773_v16 }
 0x3d7   :  { %v763_v55 = vmax.f32 %v1333_v54, 0.0 }
 0x3d8   :  { %v712_v56 = vpop.f32.mrf.mxu1 }
 0x3d9   :  { %v761_v58 = vmax.f32 %v712_v56, 0.0  ;;  %v775_v62 = vpack.c.bf16 %v763_v55, %v762_v59 }
 0x3da   :  { %v1336_v60 = vpop.f32.mrf.mxu1 }
 0x3db   :  { %v774_v61 = vpack.c.bf16 %v761_v58, %v760_v57  ;;  %v766_v12 = vmax.f32 %v1336_v60, 0.0 }
 0x3dc   :  { %v725_v6 = vpop.f32.mrf.mxu1 }
 0x3dd   :  { %1362 = vmatprep.mubr.bf16.mxu0 %v774_v61  ;;  %v764_v10 = vmax.f32 %v725_v6, 0.0 }
 0x3de   :  { %v1337_v7 = vpop.f32.mrf.mxu1  ;;  %1363 = vmatmul.mubr.bf16.gmra.mxu0 %v775_v62 }
 0x3df   :  { %v767_v8 = vmax.f32 %v1337_v7, 0.0 }
 0x3e0   :  { %v728_v9 = vpop.f32.mrf.mxu1 }
 0x3e1   :  { %v765_v11 = vmax.f32 %v728_v9, 0.0  ;;  %v777_v15 = vpack.c.bf16 %v767_v8, %v766_v12 }
 0x3e2   :  { %v1340_v13 = vpop.f32.mrf.mxu1 }
 0x3e3   :  { %v776_v14 = vpack.c.bf16 %v765_v11, %v764_v10  ;;  %v770_v23 = vmax.f32 %v1340_v13, 0.0 }
 0x3e4   :  { %v741_v17 = vpop.f32.mrf.mxu1 }
 0x3e5   :  { %1366 = vmatprep.mubr.bf16.mxu0 %v776_v14  ;;  %v768_v21 = vmax.f32 %v741_v17, 0.0 }
 0x3e6   :  { %v1341_v18 = vpop.f32.mrf.mxu1  ;;  %1367 = vmatmul.mubr.bf16.gmra.mxu0 %v777_v15 }
 0x3e7   :  { %v771_v19 = vmax.f32 %v1341_v18, 0.0 }
 0x3e8   :  { %v744_v20 = vpop.f32.mrf.mxu1 }
 0x3e9   :  { %v769_v22 = vmax.f32 %v744_v20, 0.0  ;;  %v779_v25 = vpack.c.bf16 %v771_v19, %v770_v23 }
 0x3eb   :  { %v778_v24 = vpack.c.bf16 %v769_v22, %v768_v21 }
 0x3ed   :  { %1370 = vmatprep.mubr.bf16.mxu0 %v778_v24 }
 0x3ee   :  { %1371 = vmatmul.mubr.bf16.gmra.mxu0 %v779_v25 }
 0x496   :  { %v1360_v26 = vpop.f32.mrf.mxu0 }
 0x497   :  { %v894_v61 = vadd.f32 %v1360_v26, %v1109_v40 }
 0x498   :  { %v885_v27 = vpop.f32.mrf.mxu0 }
 0x499   :  { %v886_v7 = vadd.f32 %v1109_v40, %v885_v27 }
 0x49a   :  { %v1361_v28 = vpop.f32.mrf.mxu0 }
 0x49b   :  { %v897_v59 = vadd.f32 %v1361_v28, %v1109_v40 }
 0x49c   :  { %v888_v29 = vpop.f32.mrf.mxu0 }
 0x49d   :  { %v949_v62 = vpack.c.bf16 %v897_v59, %v894_v61  ;;  %v889_v6 = vadd.f32 %v1109_v40, %v888_v29 }
 0x49e   :  { %v1364_v30 = vpop.f32.mrf.mxu0 }
 0x49f   :  { %v910_v55 = vadd.f32 %v1364_v30, %v1109_v40  ;;  %v948_v8 = vpack.c.bf16 %v889_v6, %v886_v7 }
 0x4a0   :  { %v901_v31 = vpop.f32.mrf.mxu0 }
 0x4a1   :  { %v902_v58 = vadd.f32 %v1109_v40, %v901_v31 }
 0x4a2   :  { %v1365_v32 = vpop.f32.mrf.mxu0 }
 0x4a3   :  { %v913_v53 = vadd.f32 %v1365_v32, %v1109_v40 }
 0x4a4   :  { %v904_v33 = vpop.f32.mrf.mxu0 }
 0x4a5   :  { %v951_v56 = vpack.c.bf16 %v913_v53, %v910_v55  ;;  %v905_v57 = vadd.f32 %v1109_v40, %v904_v33 }
 0x4a6   :  { %v1368_v34 = vpop.f32.mrf.mxu0 }
 0x4a7   :  { %v926_v50 = vadd.f32 %v1368_v34, %v1109_v40  ;;  %v950_v60 = vpack.c.bf16 %v905_v57, %v902_v58 }
 0x4a8   :  { %v917_v35 = vpop.f32.mrf.mxu0 }
 0x4a9   :  { %v918_v16 = vadd.f32 %v1109_v40, %v917_v35 }
 0x4aa   :  { %v1369_v36 = vpop.f32.mrf.mxu0 }
 0x4ab   :  { %v929_v48 = vadd.f32 %v1369_v36, %v1109_v40 }
 0x4ac   :  { %v920_v37 = vpop.f32.mrf.mxu0 }
 0x4ad   :  { %v953_v51 = vpack.c.bf16 %v929_v48, %v926_v50  ;;  %v921_v52 = vadd.f32 %v1109_v40, %v920_v37 }
 0x4ae   :  { %v1372_v38 = vpop.f32.mrf.mxu0 }
 0x4af   :  { %v942_v42 = vadd.f32 %v1372_v38, %v1109_v40  ;;  %v952_v54 = vpack.c.bf16 %v921_v52, %v918_v16 }
 0x4b0   :  { %v933_v39 = vpop.f32.mrf.mxu0 }
 0x4b1   :  { %v934_v45 = vadd.f32 %v1109_v40, %v933_v39 }
 0x4b2   :  { %v1373_v41 = vpop.f32.mrf.mxu0 }
 0x4b3   :  { %v945_v43 = vadd.f32 %v1373_v41, %v1109_v40 }
 0x4b4   :  { %v936_v44 = vpop.f32.mrf.mxu0 }
 0x4b5   :  { %v955_v46 = vpack.c.bf16 %v945_v43, %v942_v42  ;;  %v937_v47 = vadd.f32 %v1109_v40, %v936_v44 }
 0x4b7   :  { %v954_v49 = vpack.c.bf16 %v937_v47, %v934_v45  ;;  %1374 = vmatprep.subr.bf16.mxu1 %v955_v46 }
 0x4b8   :  { %1375 = vmatpush3.bf16.msra.mxu1 %v955_v46 }
 0x4b9   :  { %1376 = vmatprep.subr.bf16.mxu1 %v954_v49 }
 0x4bc   :  { %1377 = vmatpush3.bf16.msra.mxu1 %v954_v49 }
 0x4bd   :  { %1378 = vmatprep.subr.bf16.mxu1 %v953_v51 }
 0x4c0   :  { %1379 = vmatpush3.bf16.msra.mxu1 %v953_v51 }
 0x4c1   :  { %1380 = vmatprep.subr.bf16.mxu1 %v952_v54 }
 0x4c4   :  { %1381 = vmatpush3.bf16.msra.mxu1 %v952_v54 }
 0x4c5   :  { %1382 = vmatprep.subr.bf16.mxu1 %v951_v56 }
 0x4c8   :  { %1383 = vmatpush3.bf16.msra.mxu1 %v951_v56 }
 0x4c9   :  { %1384 = vmatprep.subr.bf16.mxu1 %v950_v60 }
 0x4cc   :  { %1385 = vmatpush3.bf16.msra.mxu1 %v950_v60 }
 0x4cd   :  { %1386 = vmatprep.subr.bf16.mxu1 %v949_v62 }
 0x4d0   :  { %1387 = vmatpush3.bf16.msra.mxu1 %v949_v62 }
 0x4d1   :  { %1388 = vmatprep.subr.bf16.mxu1 %v948_v8 }
 0x4d4   :  { %1389 = vmatpush3.bf16.msra.mxu1 %v948_v8 }
 0x4d7   :  { %1391 = vmatmul.mubr.bf16.vlgmr.msra.gmra.mxu1 %v1609_v63 }
 0x4d8   :  { %1394 = vmatprep.mubr.bf16.mxu1 %v1614_v0 }
 0x4df   :  { %1395 = vmatmul.mubr.bf16.gmra.mxu1 %v1621_v1 }
 0x4e0   :  { %1398 = vmatprep.mubr.bf16.mxu1 %v1626_v2 }
 0x4e7   :  { %1399 = vmatmul.mubr.bf16.gmra.mxu1 %v1633_v3 }
 0x4e8   :  { %1402 = vmatprep.mubr.bf16.mxu1 %v1638_v4 }
 0x4ef   :  { %1403 = vmatmul.mubr.bf16.gmra.mxu1 %v1645_v5 }
 0x597   :  { %v1392_v9 = vpop.f32.mrf.mxu1 }
 0x598   :  { %1055 = vst [vmem:[%s1726_s8 + $0x10] sm:$0xff] %v1392_v9 }
 0x599   :  { %v990_v10 = vpop.f32.mrf.mxu1 }
 0x59a   :  { %1053 = vst [vmem:[%s1726_s8] sm:$0xff] %v990_v10 }
 0x59b   :  { %v1393_v63 = vpop.f32.mrf.mxu1 }
 0x59c   :  { %1056 = vst [vmem:[%s1726_s8 + $0x18] sm:$0xff] %v1393_v63 }
 0x59d   :  { %v993_v0 = vpop.f32.mrf.mxu1 }
 0x59e   :  { %1054 = vst [vmem:[%s1726_s8 + $0x8] sm:$0xff] %v993_v0 }
 0x59f   :  { %v1396_v1 = vpop.f32.mrf.mxu1 }
 0x5a0   :  { %1059 = vst [vmem:[%s1726_s8 + $0x30] sm:$0xff] %v1396_v1 }
 0x5a1   :  { %v1006_v2 = vpop.f32.mrf.mxu1 }
 0x5a2   :  { %1057 = vst [vmem:[%s1726_s8 + $0x20] sm:$0xff] %v1006_v2 }
 0x5a3   :  { %v1397_v3 = vpop.f32.mrf.mxu1 }
 0x5a4   :  { %1060 = vst [vmem:[%s1726_s8 + $0x38] sm:$0xff] %v1397_v3 }
 0x5a5   :  { %v1009_v4 = vpop.f32.mrf.mxu1 }
 0x5a6   :  { %1058 = vst [vmem:[%s1726_s8 + $0x28] sm:$0xff] %v1009_v4 }
 0x5a7   :  { %v1400_v5 = vpop.f32.mrf.mxu1 }
 0x5a8   :  { %1063 = vst [vmem:[%s1726_s8 + $0x50] sm:$0xff] %v1400_v5 }
 0x5a9   :  { %v1022_v11 = vpop.f32.mrf.mxu1 }
 0x5aa   :  { %1061 = vst [vmem:[%s1726_s8 + $0x40] sm:$0xff] %v1022_v11 }
 0x5ab   :  { %v1401_v12 = vpop.f32.mrf.mxu1 }
 0x5ac   :  { %1064 = vst [vmem:[%s1726_s8 + $0x58] sm:$0xff] %v1401_v12 }
 0x5ad   :  { %v1025_v13 = vpop.f32.mrf.mxu1 }
 0x5ae   :  { %1062 = vst [vmem:[%s1726_s8 + $0x48] sm:$0xff] %v1025_v13 }
 0x5af   :  { %v1404_v14 = vpop.f32.mrf.mxu1 }
 0x5b0   :  { %1067 = vst [vmem:[%s1726_s8 + $0x70] sm:$0xff] %v1404_v14 }
 0x5b1   :  { %v1038_v15 = vpop.f32.mrf.mxu1 }
 0x5b2   :  { %1065 = vst [vmem:[%s1726_s8 + $0x60] sm:$0xff] %v1038_v15 }
 0x5b3   :  { %v1405_v17 = vpop.f32.mrf.mxu1 }
 0x5b4   :  { %1068 = vst [vmem:[%s1726_s8 + $0x78] sm:$0xff] %v1405_v17 }
 0x5b5   :  { %v1041_v18 = vpop.f32.mrf.mxu1 }
 0x5b6   :  { %1066 = vst [vmem:[%s1726_s8 + $0x68] sm:$0xff] %v1041_v18 }
 0x5b7   :  { %1073 = vsyncpa [#allocation3], 1 }
 0x5b8   :  { %1074 = vsyncpa [#allocation5], 1 }

</bundles_post_ra>
